<compile_context>
chip_gen: v7x
topology: tpu7x:2x2x1
jax: 0.10.0
libtpu: 0.0.40
codegen_flags: <defaults>
</compile_context>

<pallas_src>
import jax
import jax.numpy as jnp
from jax.experimental import pallas as pl
from jax.experimental.pallas import tpu as pltpu


# ---------------------------------------------------------------------------
# Fused Pallas kernel
# ---------------------------------------------------------------------------

def _fea_fused_kernel(u_ref, pi_ref, ni_ref,
                      dnn_w_ref, dnn_b_ref,
                      item_w_ref, item_b_ref,
                      dec_w_ref, dec_b_ref,
                      pos_ref, neg_ref):
    # u_ref:    (C, TB, D) bf16  gathered raw user rows (table 0 = server)
    # pi/ni:    (TB, D)    bf16  gathered raw pos / neg item rows
    # dnn_w:    (C, D, D)  bf16  server DNN weight split into per-table blocks
    # dnn_b:    (1, D)     f32
    # item_w:   (D, D)     bf16
    # item_b:   (1, D)     f32
    # dec_w:    (C-1, D, D) bf16 stacked per-client decoder weights
    # dec_b:    (C-1, 1, D) f32
    # pos/neg:  (C, TB)    f32   cumulative ensemble scores (row c = sum 0..c)
    c_count = u_ref.shape[0]

    # ---- server DNN on gathered user rows, concat folded into a K-sum -------
    acc = jnp.dot(u_ref[0], dnn_w_ref[0], preferred_element_type=jnp.float32)
    for c in range(1, c_count):
        acc = acc + jnp.dot(u_ref[c], dnn_w_ref[c],
                            preferred_element_type=jnp.float32)
    server_user = jnp.maximum(acc + dnn_b_ref[...], 0.0)            # (TB, D) f32

    # ---- DNN_item on gathered positive / negative item rows -----------------
    w_item = item_w_ref[...]
    b_item = item_b_ref[...]
    pi = jnp.maximum(
        jnp.dot(pi_ref[...], w_item, preferred_element_type=jnp.float32) + b_item,
        0.0)                                                         # (TB, D) f32
    ni = jnp.maximum(
        jnp.dot(ni_ref[...], w_item, preferred_element_type=jnp.float32) + b_item,
        0.0)

    # ---- per-client decoders + cumulative ensemble scores (all fused) -------
    pos_rows = []
    neg_rows = []
    p_acc = None
    n_acc = None
    for c in range(c_count):
        if c == 0:
            u_c = server_user
        else:
            u_c = jnp.maximum(
                jnp.dot(u_ref[c], dec_w_ref[c - 1],
                        preferred_element_type=jnp.float32) + dec_b_ref[c - 1],
                0.0)                                                 # (TB, D) f32
        sp = jnp.sum(u_c * pi, axis=-1)[None, :]                     # (1, TB)
        sn = jnp.sum(u_c * ni, axis=-1)[None, :]
        p_acc = sp if p_acc is None else p_acc + sp
        n_acc = sn if n_acc is None else n_acc + sn
        pos_rows.append(p_acc)
        neg_rows.append(n_acc)

    # single lane-dense full-block stores (batch lives on the lane axis)
    pos_ref[...] = jnp.concatenate(pos_rows, axis=0)
    neg_ref[...] = jnp.concatenate(neg_rows, axis=0)


def _pick_batch_tile(batch):
    # Lane-dense, VMEM-friendly tiles for big batches; whole batch otherwise.
    for t in (512, 256, 128):
        if batch % t == 0:
            return t
    return batch


def fea_fused_scores(u_rows, pi_rows, ni_rows,
                     dnn_w, dnn_b, item_w, item_b, dec_w, dec_b):
    """Runs the fused FEA forward kernel. Returns cumulative (C,B) pos/neg scores."""
    c_count, batch, d = u_rows.shape
    tb = _pick_batch_tile(batch)
    grid = (batch // tb,)

    return pl.pallas_call(
        _fea_fused_kernel,
        out_shape=(
            jax.ShapeDtypeStruct((c_count, batch), jnp.float32),
            jax.ShapeDtypeStruct((c_count, batch), jnp.float32),
        ),
        grid=grid,
        in_specs=[
            pl.BlockSpec((c_count, tb, d), lambda b: (0, b, 0)),      # users
            pl.BlockSpec((tb, d), lambda b: (b, 0)),                  # pos items
            pl.BlockSpec((tb, d), lambda b: (b, 0)),                  # neg items
            pl.BlockSpec((c_count, d, d), lambda b: (0, 0, 0)),       # dnn_w
            pl.BlockSpec((1, d), lambda b: (0, 0)),                   # dnn_b
            pl.BlockSpec((d, d), lambda b: (0, 0)),                   # item_w
            pl.BlockSpec((1, d), lambda b: (0, 0)),                   # item_b
            pl.BlockSpec((c_count - 1, d, d), lambda b: (0, 0, 0)),   # dec_w
            pl.BlockSpec((c_count - 1, 1, d), lambda b: (0, 0, 0)),   # dec_b
        ],
        out_specs=(
            pl.BlockSpec((c_count, tb), lambda b: (0, b)),
            pl.BlockSpec((c_count, tb), lambda b: (0, b)),
        ),
        compiler_params=pltpu.CompilerParams(
            dimension_semantics=("parallel",)),
    )(u_rows, pi_rows, ni_rows, dnn_w, dnn_b, item_w, item_b, dec_w, dec_b)


# ---------------------------------------------------------------------------
# FEA parameters + forward (gather / dtype casts are glue JAX)
# ---------------------------------------------------------------------------

def init_fea_params(key, user_count, item_count, emb_size, num_clients):
    assert num_clients >= 1
    client_count = num_clients + 1
    keys = jax.random.split(key, 4 + 2 * num_clients)
    p = {}
    p["emb_user"] = 0.1 * jax.random.normal(keys[0], (user_count, emb_size), jnp.float32)
    p["emb_item"] = 0.1 * jax.random.normal(keys[1], (item_count, emb_size), jnp.float32)
    p["client_user_embs"] = [
        0.1 * jax.random.normal(keys[2 + i], (user_count, emb_size), jnp.float32)
        for i in range(num_clients)
    ]
    k = 2 + num_clients
    # DNN: MLP(layers=[emb_size * client_count, emb_size]) -> single Linear+ReLU
    p["dnn_w"] = 0.1 * jax.random.normal(keys[k], (emb_size * client_count, emb_size), jnp.float32)
    p["dnn_b"] = jnp.zeros((emb_size,), jnp.float32)
    # DNN_item: MLP(layers=[emb_size, emb_size])
    p["dnn_item_w"] = 0.1 * jax.random.normal(keys[k + 1], (emb_size, emb_size), jnp.float32)
    p["dnn_item_b"] = jnp.zeros((emb_size,), jnp.float32)
    # WideAndDeep_client decoders (one per client)
    p["dec_w"] = [
        0.1 * jax.random.normal(keys[k + 2 + i], (emb_size, emb_size), jnp.float32)
        for i in range(num_clients)
    ]
    p["dec_b"] = [jnp.zeros((emb_size,), jnp.float32) for _ in range(num_clients)]
    return p


def fea_forward(params, users, pos_items, neg_items):
    client_embs = params["client_user_embs"]
    num_clients = len(client_embs)
    c_count = num_clients + 1
    d = params["emb_user"].shape[1]

    # ---- gather ONLY the batch rows (row-wise MLPs commute with the gather) --
    u_rows = jnp.stack(
        [params["emb_user"][users]] + [e[users] for e in client_embs], axis=0)   # (C,B,D)
    pi_rows = params["emb_item"][pos_items]                                      # (B,D)
    ni_rows = params["emb_item"][neg_items]                                      # (B,D)

    # ---- bf16 at the kernel boundary (MXU inputs); biases stay f32 ----------
    bf = lambda a: a.astype(jnp.bfloat16)
    u_rows, pi_rows, ni_rows = bf(u_rows), bf(pi_rows), bf(ni_rows)
    dnn_w = bf(params["dnn_w"]).reshape(c_count, d, d)        # per-table K blocks
    item_w = bf(params["dnn_item_w"])
    dec_w = bf(jnp.stack(params["dec_w"], axis=0))            # (C-1, D, D)
    dnn_b = params["dnn_b"].reshape(1, d).astype(jnp.float32)
    item_b = params["dnn_item_b"].reshape(1, d).astype(jnp.float32)
    dec_b = jnp.stack(params["dec_b"], axis=0).reshape(num_clients, 1, d).astype(jnp.float32)

    pos_cum, neg_cum = fea_fused_scores(
        u_rows, pi_rows, ni_rows, dnn_w, dnn_b, item_w, item_b, dec_w, dec_b)

    pos_score = pos_cum[c_count - 1]
    neg_score = neg_cum[c_count - 1]
    pos_score_list = [pos_cum[i] for i in range(c_count)]
    neg_score_list = [neg_cum[i] for i in range(c_count)]
    return pos_score, neg_score, pos_score_list, neg_score_list


# ---------------------------------------------------------------------------
# Pure-JAX reference (literal original semantics: full tables, then gather)
# ---------------------------------------------------------------------------

def fea_forward_reference(params, users, pos_items, neg_items):
    bfr = lambda a: a.astype(jnp.bfloat16).astype(jnp.float32)   # same rounding as kernel
    relu = lambda x: jnp.maximum(x, 0.0)

    emb_user = bfr(params["emb_user"])
    client = [bfr(e) for e in params["client_user_embs"]]
    emb_item = bfr(params["emb_item"])
    dnn_w, dnn_b = bfr(params["dnn_w"]), params["dnn_b"]
    item_w, item_b = bfr(params["dnn_item_w"]), params["dnn_item_b"]
    dec_w = [bfr(w) for w in params["dec_w"]]
    dec_b = list(params["dec_b"])

    emb_user_cat = jnp.concatenate([emb_user] + client, axis=-1)
    server_user = relu(emb_user_cat @ dnn_w + dnn_b)
    item_dnn = relu(emb_item @ item_w + item_b)
    user_list = [server_user] + [relu(client[i] @ dec_w[i] + dec_b[i])
                                 for i in range(len(client))]

    pos_score, neg_score = 0.0, 0.0
    pos_list, neg_list = [], []
    for i in range(len(user_list)):
        pos_score = pos_score + jnp.sum(user_list[i][users] * item_dnn[pos_items], axis=-1)
        neg_score = neg_score + jnp.sum(user_list[i][users] * item_dnn[neg_items], axis=-1)
        pos_list.append(pos_score)
        neg_list.append(neg_score)
    return pos_score, neg_score, pos_list, neg_list


# ---------------------------------------------------------------------------
# main
# ---------------------------------------------------------------------------

if __name__ == "__main__":
    USER_COUNT = 64
    ITEM_COUNT = 64
    EMB_SIZE = 32
    NUM_CLIENTS = 2          # -> client_count = 3
    BATCH = 8

    key = jax.random.PRNGKey(0)
    pkey, ukey, pikey, nikey = jax.random.split(key, 4)

    params = init_fea_params(pkey, USER_COUNT, ITEM_COUNT, EMB_SIZE, NUM_CLIENTS)
    users = jax.random.randint(ukey, (BATCH,), 0, USER_COUNT)
    pos_items = jax.random.randint(pikey, (BATCH,), 0, ITEM_COUNT)
    neg_items = jax.random.randint(nikey, (BATCH,), 0, ITEM_COUNT)

    pos_score, neg_score, pos_list, neg_list = fea_forward(params, users, pos_items, neg_items)
    jax.block_until_ready((pos_score, neg_score))

    # shape / finiteness checks
    assert pos_score.shape == (BATCH,) and neg_score.shape == (BATCH,)
    assert len(pos_list) == NUM_CLIENTS + 1 and len(neg_list) == NUM_CLIENTS + 1
    assert bool(jnp.all(jnp.isfinite(pos_score))) and bool(jnp.all(jnp.isfinite(neg_score)))
    # cumulative consistency: last entry equals the returned total score
    assert bool(jnp.allclose(pos_list[-1], pos_score)) and bool(jnp.allclose(neg_list[-1], neg_score))

    # numeric check against the literal (full-table-then-gather) reference
    rp, rn, rpl, rnl = fea_forward_reference(params, users, pos_items, neg_items)
    assert bool(jnp.allclose(pos_score, rp, rtol=1e-2, atol=1e-2))
    assert bool(jnp.allclose(neg_score, rn, rtol=1e-2, atol=1e-2))
    for a, b in zip(pos_list, rpl):
        assert bool(jnp.allclose(a, b, rtol=1e-2, atol=1e-2))
    for a, b in zip(neg_list, rnl):
        assert bool(jnp.allclose(a, b, rtol=1e-2, atol=1e-2))

    print("KERNEL_OK")
</pallas_src>

<mosaic_0001>
module attributes {stable_mosaic.version = 11 : i64} {
  func.func @_fea_fused_kernel(%arg0: i32, %arg1: memref<3x8x32xbf16, #tpu.memory_space<vmem>>, %arg2: memref<8x32xbf16, #tpu.memory_space<vmem>>, %arg3: memref<8x32xbf16, #tpu.memory_space<vmem>>, %arg4: memref<3x32x32xbf16, #tpu.memory_space<vmem>>, %arg5: memref<1x32xf32, #tpu.memory_space<vmem>>, %arg6: memref<32x32xbf16, #tpu.memory_space<vmem>>, %arg7: memref<1x32xf32, #tpu.memory_space<vmem>>, %arg8: memref<2x32x32xbf16, #tpu.memory_space<vmem>>, %arg9: memref<2x1x32xf32, #tpu.memory_space<vmem>>, %arg10: memref<3x8xf32, #tpu.memory_space<vmem>>, %arg11: memref<3x8xf32, #tpu.memory_space<vmem>>) attributes {dimension_semantics = [#tpu.dimension_semantics<parallel>], iteration_bounds = array<i64: 1>, scalar_prefetch = 0 : i64, scratch_operands = 0 : i64, tpu.core_type = #tpu.core_type<tc>, window_params = [{transform_indices = @transform_0, window_bounds = array<i64: 3, 8, 32>}, {transform_indices = @transform_1, window_bounds = array<i64: 8, 32>}, {transform_indices = @transform_2, window_bounds = array<i64: 8, 32>}, {pipeline_mode = #tpu.pipeline_mode<synchronous>, transform_indices = @transform_3, window_bounds = array<i64: 3, 32, 32>}, {pipeline_mode = #tpu.pipeline_mode<synchronous>, transform_indices = @transform_4, window_bounds = array<i64: 1, 32>}, {pipeline_mode = #tpu.pipeline_mode<synchronous>, transform_indices = @transform_5, window_bounds = array<i64: 32, 32>}, {pipeline_mode = #tpu.pipeline_mode<synchronous>, transform_indices = @transform_6, window_bounds = array<i64: 1, 32>}, {pipeline_mode = #tpu.pipeline_mode<synchronous>, transform_indices = @transform_7, window_bounds = array<i64: 2, 32, 32>}, {pipeline_mode = #tpu.pipeline_mode<synchronous>, transform_indices = @transform_8, window_bounds = array<i64: 2, 1, 32>}, {transform_indices = @transform_9, window_bounds = array<i64: 3, 8>}, {transform_indices = @transform_10, window_bounds = array<i64: 3, 8>}]} {
    %c0 = arith.constant 0 : index
    %c0_0 = arith.constant 0 : index
    %c0_1 = arith.constant 0 : index
    %0 = vector.load %arg1[%c0, %c0_0, %c0_1] : memref<3x8x32xbf16, #tpu.memory_space<vmem>>, vector<1x8x32xbf16>
    %1 = vector.shape_cast %0 : vector<1x8x32xbf16> to vector<8x32xbf16>
    %c0_2 = arith.constant 0 : index
    %c0_3 = arith.constant 0 : index
    %c0_4 = arith.constant 0 : index
    %2 = vector.load %arg4[%c0_2, %c0_3, %c0_4] : memref<3x32x32xbf16, #tpu.memory_space<vmem>>, vector<1x32x32xbf16>
    %3 = vector.shape_cast %2 : vector<1x32x32xbf16> to vector<32x32xbf16>
    %cst = arith.constant dense<0.000000e+00> : vector<8x32xf32>
    %4 = tpu.matmul %1, %3, %cst {dimension_numbers = #tpu.dot_dimension_numbers<[1], [0], [0], [1], [0, 0, 1, 1], [], []>} : vector<8x32xbf16>, vector<32x32xbf16>, vector<8x32xf32> -> vector<8x32xf32>
    %c1 = arith.constant 1 : index
    %c0_5 = arith.constant 0 : index
    %c0_6 = arith.constant 0 : index
    %5 = vector.load %arg1[%c1, %c0_5, %c0_6] : memref<3x8x32xbf16, #tpu.memory_space<vmem>>, vector<1x8x32xbf16>
    %6 = vector.shape_cast %5 : vector<1x8x32xbf16> to vector<8x32xbf16>
    %c1_7 = arith.constant 1 : index
    %c0_8 = arith.constant 0 : index
    %c0_9 = arith.constant 0 : index
    %7 = vector.load %arg4[%c1_7, %c0_8, %c0_9] : memref<3x32x32xbf16, #tpu.memory_space<vmem>>, vector<1x32x32xbf16>
    %8 = vector.shape_cast %7 : vector<1x32x32xbf16> to vector<32x32xbf16>
    %cst_10 = arith.constant dense<0.000000e+00> : vector<8x32xf32>
    %9 = tpu.matmul %6, %8, %cst_10 {dimension_numbers = #tpu.dot_dimension_numbers<[1], [0], [0], [1], [0, 0, 1, 1], [], []>} : vector<8x32xbf16>, vector<32x32xbf16>, vector<8x32xf32> -> vector<8x32xf32>
    %10 = arith.addf %4, %9 : vector<8x32xf32>
    %c2 = arith.constant 2 : index
    %c0_11 = arith.constant 0 : index
    %c0_12 = arith.constant 0 : index
    %11 = vector.load %arg1[%c2, %c0_11, %c0_12] : memref<3x8x32xbf16, #tpu.memory_space<vmem>>, vector<1x8x32xbf16>
    %12 = vector.shape_cast %11 : vector<1x8x32xbf16> to vector<8x32xbf16>
    %c2_13 = arith.constant 2 : index
    %c0_14 = arith.constant 0 : index
    %c0_15 = arith.constant 0 : index
    %13 = vector.load %arg4[%c2_13, %c0_14, %c0_15] : memref<3x32x32xbf16, #tpu.memory_space<vmem>>, vector<1x32x32xbf16>
    %14 = vector.shape_cast %13 : vector<1x32x32xbf16> to vector<32x32xbf16>
    %cst_16 = arith.constant dense<0.000000e+00> : vector<8x32xf32>
    %15 = tpu.matmul %12, %14, %cst_16 {dimension_numbers = #tpu.dot_dimension_numbers<[1], [0], [0], [1], [0, 0, 1, 1], [], []>} : vector<8x32xbf16>, vector<32x32xbf16>, vector<8x32xf32> -> vector<8x32xf32>
    %16 = arith.addf %10, %15 : vector<8x32xf32>
    %c0_17 = arith.constant 0 : index
    %c0_18 = arith.constant 0 : index
    %17 = vector.load %arg5[%c0_17, %c0_18] : memref<1x32xf32, #tpu.memory_space<vmem>>, vector<1x32xf32>
    %18 = vector.broadcast %17 : vector<1x32xf32> to vector<8x32xf32>
    %19 = arith.addf %16, %18 : vector<8x32xf32>
    %cst_19 = arith.constant 0.000000e+00 : f32
    %20 = vector.broadcast %cst_19 : f32 to vector<8x32xf32>
    %21 = arith.maximumf %19, %20 : vector<8x32xf32>
    %c0_20 = arith.constant 0 : index
    %c0_21 = arith.constant 0 : index
    %22 = vector.load %arg6[%c0_20, %c0_21] : memref<32x32xbf16, #tpu.memory_space<vmem>>, vector<32x32xbf16>
    %c0_22 = arith.constant 0 : index
    %c0_23 = arith.constant 0 : index
    %23 = vector.load %arg7[%c0_22, %c0_23] : memref<1x32xf32, #tpu.memory_space<vmem>>, vector<1x32xf32>
    %c0_24 = arith.constant 0 : index
    %c0_25 = arith.constant 0 : index
    %24 = vector.load %arg2[%c0_24, %c0_25] : memref<8x32xbf16, #tpu.memory_space<vmem>>, vector<8x32xbf16>
    %cst_26 = arith.constant dense<0.000000e+00> : vector<8x32xf32>
    %25 = tpu.matmul %24, %22, %cst_26 {dimension_numbers = #tpu.dot_dimension_numbers<[1], [0], [0], [1], [0, 0, 1, 1], [], []>} : vector<8x32xbf16>, vector<32x32xbf16>, vector<8x32xf32> -> vector<8x32xf32>
    %26 = vector.broadcast %23 : vector<1x32xf32> to vector<8x32xf32>
    %27 = arith.addf %25, %26 : vector<8x32xf32>
    %cst_27 = arith.constant 0.000000e+00 : f32
    %28 = vector.broadcast %cst_27 : f32 to vector<8x32xf32>
    %29 = arith.maximumf %27, %28 : vector<8x32xf32>
    %c0_28 = arith.constant 0 : index
    %c0_29 = arith.constant 0 : index
    %30 = vector.load %arg3[%c0_28, %c0_29] : memref<8x32xbf16, #tpu.memory_space<vmem>>, vector<8x32xbf16>
    %cst_30 = arith.constant dense<0.000000e+00> : vector<8x32xf32>
    %31 = tpu.matmul %30, %22, %cst_30 {dimension_numbers = #tpu.dot_dimension_numbers<[1], [0], [0], [1], [0, 0, 1, 1], [], []>} : vector<8x32xbf16>, vector<32x32xbf16>, vector<8x32xf32> -> vector<8x32xf32>
    %32 = vector.broadcast %23 : vector<1x32xf32> to vector<8x32xf32>
    %33 = arith.addf %31, %32 : vector<8x32xf32>
    %cst_31 = arith.constant 0.000000e+00 : f32
    %34 = vector.broadcast %cst_31 : f32 to vector<8x32xf32>
    %35 = arith.maximumf %33, %34 : vector<8x32xf32>
    %36 = arith.mulf %21, %29 : vector<8x32xf32>
    %cst_32 = arith.constant dense<0.000000e+00> : vector<8xf32>
    %37 = vector.multi_reduction <add>, %36, %cst_32 [1] : vector<8x32xf32> to vector<8xf32>
    %38 = vector.shape_cast %37 : vector<8xf32> to vector<1x8xf32>
    %39 = arith.mulf %21, %35 : vector<8x32xf32>
    %cst_33 = arith.constant dense<0.000000e+00> : vector<8xf32>
    %40 = vector.multi_reduction <add>, %39, %cst_33 [1] : vector<8x32xf32> to vector<8xf32>
    %41 = vector.shape_cast %40 : vector<8xf32> to vector<1x8xf32>
    %c1_34 = arith.constant 1 : index
    %c0_35 = arith.constant 0 : index
    %c0_36 = arith.constant 0 : index
    %42 = vector.load %arg1[%c1_34, %c0_35, %c0_36] : memref<3x8x32xbf16, #tpu.memory_space<vmem>>, vector<1x8x32xbf16>
    %43 = vector.shape_cast %42 : vector<1x8x32xbf16> to vector<8x32xbf16>
    %c0_37 = arith.constant 0 : index
    %c0_38 = arith.constant 0 : index
    %c0_39 = arith.constant 0 : index
    %44 = vector.load %arg8[%c0_37, %c0_38, %c0_39] : memref<2x32x32xbf16, #tpu.memory_space<vmem>>, vector<1x32x32xbf16>
    %45 = vector.shape_cast %44 : vector<1x32x32xbf16> to vector<32x32xbf16>
    %cst_40 = arith.constant dense<0.000000e+00> : vector<8x32xf32>
    %46 = tpu.matmul %43, %45, %cst_40 {dimension_numbers = #tpu.dot_dimension_numbers<[1], [0], [0], [1], [0, 0, 1, 1], [], []>} : vector<8x32xbf16>, vector<32x32xbf16>, vector<8x32xf32> -> vector<8x32xf32>
    %c0_41 = arith.constant 0 : index
    %c0_42 = arith.constant 0 : index
    %c0_43 = arith.constant 0 : index
    %47 = vector.load %arg9[%c0_41, %c0_42, %c0_43] : memref<2x1x32xf32, #tpu.memory_space<vmem>>, vector<1x1x32xf32>
    %48 = vector.shape_cast %47 : vector<1x1x32xf32> to vector<1x32xf32>
    %49 = vector.broadcast %48 : vector<1x32xf32> to vector<8x32xf32>
    %50 = arith.addf %46, %49 : vector<8x32xf32>
    %cst_44 = arith.constant 0.000000e+00 : f32
    %51 = vector.broadcast %cst_44 : f32 to vector<8x32xf32>
    %52 = arith.maximumf %50, %51 : vector<8x32xf32>
    %53 = arith.mulf %52, %29 : vector<8x32xf32>
    %cst_45 = arith.constant dense<0.000000e+00> : vector<8xf32>
    %54 = vector.multi_reduction <add>, %53, %cst_45 [1] : vector<8x32xf32> to vector<8xf32>
    %55 = vector.shape_cast %54 : vector<8xf32> to vector<1x8xf32>
    %56 = arith.mulf %52, %35 : vector<8x32xf32>
    %cst_46 = arith.constant dense<0.000000e+00> : vector<8xf32>
    %57 = vector.multi_reduction <add>, %56, %cst_46 [1] : vector<8x32xf32> to vector<8xf32>
    %58 = vector.shape_cast %57 : vector<8xf32> to vector<1x8xf32>
    %59 = arith.addf %38, %55 : vector<1x8xf32>
    %60 = arith.addf %41, %58 : vector<1x8xf32>
    %c2_47 = arith.constant 2 : index
    %c0_48 = arith.constant 0 : index
    %c0_49 = arith.constant 0 : index
    %61 = vector.load %arg1[%c2_47, %c0_48, %c0_49] : memref<3x8x32xbf16, #tpu.memory_space<vmem>>, vector<1x8x32xbf16>
    %62 = vector.shape_cast %61 : vector<1x8x32xbf16> to vector<8x32xbf16>
    %c1_50 = arith.constant 1 : index
    %c0_51 = arith.constant 0 : index
    %c0_52 = arith.constant 0 : index
    %63 = vector.load %arg8[%c1_50, %c0_51, %c0_52] : memref<2x32x32xbf16, #tpu.memory_space<vmem>>, vector<1x32x32xbf16>
    %64 = vector.shape_cast %63 : vector<1x32x32xbf16> to vector<32x32xbf16>
    %cst_53 = arith.constant dense<0.000000e+00> : vector<8x32xf32>
    %65 = tpu.matmul %62, %64, %cst_53 {dimension_numbers = #tpu.dot_dimension_numbers<[1], [0], [0], [1], [0, 0, 1, 1], [], []>} : vector<8x32xbf16>, vector<32x32xbf16>, vector<8x32xf32> -> vector<8x32xf32>
    %c1_54 = arith.constant 1 : index
    %c0_55 = arith.constant 0 : index
    %c0_56 = arith.constant 0 : index
    %66 = vector.load %arg9[%c1_54, %c0_55, %c0_56] : memref<2x1x32xf32, #tpu.memory_space<vmem>>, vector<1x1x32xf32>
    %67 = vector.shape_cast %66 : vector<1x1x32xf32> to vector<1x32xf32>
    %68 = vector.broadcast %67 : vector<1x32xf32> to vector<8x32xf32>
    %69 = arith.addf %65, %68 : vector<8x32xf32>
    %cst_57 = arith.constant 0.000000e+00 : f32
    %70 = vector.broadcast %cst_57 : f32 to vector<8x32xf32>
    %71 = arith.maximumf %69, %70 : vector<8x32xf32>
    %72 = arith.mulf %71, %29 : vector<8x32xf32>
    %cst_58 = arith.constant dense<0.000000e+00> : vector<8xf32>
    %73 = vector.multi_reduction <add>, %72, %cst_58 [1] : vector<8x32xf32> to vector<8xf32>
    %74 = vector.shape_cast %73 : vector<8xf32> to vector<1x8xf32>
    %75 = arith.mulf %71, %35 : vector<8x32xf32>
    %cst_59 = arith.constant dense<0.000000e+00> : vector<8xf32>
    %76 = vector.multi_reduction <add>, %75, %cst_59 [1] : vector<8x32xf32> to vector<8xf32>
    %77 = vector.shape_cast %76 : vector<8xf32> to vector<1x8xf32>
    %78 = arith.addf %59, %74 : vector<1x8xf32>
    %79 = arith.addf %60, %77 : vector<1x8xf32>
    %80 = tpu.concatenate %38, %59, %78 in 0 : vector<1x8xf32>, vector<1x8xf32>, vector<1x8xf32> -> vector<3x8xf32>
    %c0_60 = arith.constant 0 : index
    %c0_61 = arith.constant 0 : index
    %81 = vector.load %arg10[%c0_60, %c0_61] : memref<3x8xf32, #tpu.memory_space<vmem>>, vector<3x8xf32>
    tpu.vector_store %arg10[%c0_60, %c0_61], %80 {strides = array<i32>} : memref<3x8xf32, #tpu.memory_space<vmem>>, vector<3x8xf32>,
    %82 = tpu.concatenate %41, %60, %79 in 0 : vector<1x8xf32>, vector<1x8xf32>, vector<1x8xf32> -> vector<3x8xf32>
    %c0_62 = arith.constant 0 : index
    %c0_63 = arith.constant 0 : index
    %83 = vector.load %arg11[%c0_62, %c0_63] : memref<3x8xf32, #tpu.memory_space<vmem>>, vector<3x8xf32>
    tpu.vector_store %arg11[%c0_62, %c0_63], %82 {strides = array<i32>} : memref<3x8xf32, #tpu.memory_space<vmem>>, vector<3x8xf32>,
    return
  }
  func.func @transform_0(%arg0: i32) -> (i32, i32, i32) {
    %c0_i32 = arith.constant 0 : i32
    %c0_i32_0 = arith.constant 0 : i32
    %c0_i32_1 = arith.constant 0 : i32
    return %c0_i32, %arg0, %c0_i32_0 : i32, i32, i32
  }
  func.func @transform_1(%arg0: i32) -> (i32, i32) {
    %c0_i32 = arith.constant 0 : i32
    %c0_i32_0 = arith.constant 0 : i32
    return %arg0, %c0_i32 : i32, i32
  }
  func.func @transform_2(%arg0: i32) -> (i32, i32) {
    %c0_i32 = arith.constant 0 : i32
    %c0_i32_0 = arith.constant 0 : i32
    return %arg0, %c0_i32 : i32, i32
  }
  func.func @transform_3(%arg0: i32) -> (i32, i32, i32) {
    %c0_i32 = arith.constant 0 : i32
    %c0_i32_0 = arith.constant 0 : i32
    %c0_i32_1 = arith.constant 0 : i32
    %c0_i32_2 = arith.constant 0 : i32
    return %c0_i32, %c0_i32_0, %c0_i32_1 : i32, i32, i32
  }
  func.func @transform_4(%arg0: i32) -> (i32, i32) {
    %c0_i32 = arith.constant 0 : i32
    %c0_i32_0 = arith.constant 0 : i32
    %c0_i32_1 = arith.constant 0 : i32
    return %c0_i32, %c0_i32_0 : i32, i32
  }
  func.func @transform_5(%arg0: i32) -> (i32, i32) {
    %c0_i32 = arith.constant 0 : i32
    %c0_i32_0 = arith.constant 0 : i32
    %c0_i32_1 = arith.constant 0 : i32
    return %c0_i32, %c0_i32_0 : i32, i32
  }
  func.func @transform_6(%arg0: i32) -> (i32, i32) {
    %c0_i32 = arith.constant 0 : i32
    %c0_i32_0 = arith.constant 0 : i32
    %c0_i32_1 = arith.constant 0 : i32
    return %c0_i32, %c0_i32_0 : i32, i32
  }
  func.func @transform_7(%arg0: i32) -> (i32, i32, i32) {
    %c0_i32 = arith.constant 0 : i32
    %c0_i32_0 = arith.constant 0 : i32
    %c0_i32_1 = arith.constant 0 : i32
    %c0_i32_2 = arith.constant 0 : i32
    return %c0_i32, %c0_i32_0, %c0_i32_1 : i32, i32, i32
  }
  func.func @transform_8(%arg0: i32) -> (i32, i32, i32) {
    %c0_i32 = arith.constant 0 : i32
    %c0_i32_0 = arith.constant 0 : i32
    %c0_i32_1 = arith.constant 0 : i32
    %c0_i32_2 = arith.constant 0 : i32
    return %c0_i32, %c0_i32_0, %c0_i32_1 : i32, i32, i32
  }
  func.func @transform_9(%arg0: i32) -> (i32, i32) {
    %c0_i32 = arith.constant 0 : i32
    %c0_i32_0 = arith.constant 0 : i32
    return %c0_i32, %arg0 : i32, i32
  }
  func.func @transform_10(%arg0: i32) -> (i32, i32) {
    %c0_i32 = arith.constant 0 : i32
    %c0_i32_0 = arith.constant 0 : i32
    return %c0_i32, %arg0 : i32, i32
  }
}

</mosaic_0001>

<bundles_post_ra>
// kernel: tpu_custom_call.1
= control target key start
LH: loop header
LB: loop body
LE: loop exit
PB: predicated region body
PF: predicated region fallthrough
CT: control target
= control target key end

     0   :  { %16 = vsyncpa [#allocation3], 0  ;;  %s1187_s0 = inlined_call_operand.hbm [shape: bf16[3,8,32], index: 0, kind: input, shape index: {}]   ;;  %s1188_s1 = inlined_call_operand.hbm [shape: bf16[8,32], index: 1, kind: input, shape index: {}]   ;;  %s1189_s2 = inlined_call_operand.hbm [shape: bf16[8,32], index: 2, kind: input, shape index: {}]   ;;  %s1190_s3 = inlined_call_operand.hbm [shape: bf16[3,32,32], index: 3, kind: input, shape index: {}]   ;;  %s1191_s4 = inlined_call_operand.hbm [shape: f32[1,32], index: 4, kind: input, shape index: {}]   ;;  %s1192_s5 = inlined_call_operand.vmem [shape: bf16[32,32], index: 5, kind: input, shape index: {}]   ;;  %s1193_s6 = inlined_call_operand.vmem [shape: f32[1,32], index: 6, kind: input, shape index: {}]   ;;  %s1194_s7 = inlined_call_operand.hbm [shape: bf16[2,32,32], index: 7, kind: input, shape index: {}]   ;;  %s1195_s8 = inlined_call_operand.vmem [shape: f32[2,1,32], index: 8, kind: input, shape index: {}]   ;;  %s1196_s9 = inlined_call_operand.hbm [shape: f32[3,8], index: 9, kind: output, shape index: {0}]   ;;  %s1197_s10 = inlined_call_operand.hbm [shape: f32[3,8], index: 10, kind: output, shape index: {1}]  }
   0x1   :  { %17 = vsyncpa [#allocation6], 0 }
   0x2   :  { %18 = vsyncpa [#allocation9], 0 }
   0x3   :  { %19 = vsyncpa [#allocation12], 0 }
   0x4   :  { %20 = vsyncpa [#allocation4], 0 }
   0x5   :  { %21 = vsyncpa [#allocation15], 0  ;;  %s971_s13 = smov [#allocation5]   ;;  %s783_s17 = scalar_lea.hbm %s1188_s1, 64 }
   0x6   :  { %s40_s14 = sshll.u32 %s971_s13, 4  ;;  %p784_p0 = scmp.ne.s32.totalorder %s1188_s1, %s783_s17  ;;  %s41_s14 = int_to_ptr.vmem [resolvable:$true] %s40_s14 }
   0x7   :  { %p787_p1 = scmp.lt.u32.totalorder %s783_s17, %s1188_s1 }
   0x9   :  { %p789_p2 = pnand %p787_p1, %p784_p0 }
   0xb   :  { %792 = shalt.err (!%p789_p2)
}
   0xc   :  { %s793_s22 = scalar_lea.vmem %s41_s14, 64  ;;  %p798_p4 = scmp.lt.s32.totalorder %s41_s14, %s41_s14 }
   0xd   :  { %p794_p3 = scmp.ne.s32.totalorder %s41_s14, %s793_s22  ;;  %p799_p5 = scmp.lt.s32.totalorder %s793_s22, %s793_s22 }
   0xf   :  { %p800_p6 = por %p799_p5, %p798_p4 }
  0x11   :  { %p801_p7 = pnand %p800_p6, %p794_p3 }
  0x13   :  { %804 = shalt.err (!%p801_p7)
}
  0x14   :  { %43 = dma.hbm_to_vmem [thread:$0]  %s1188_s1, 64, %s41_s14, [#allocation6]  }
  0x15   :  { %s972_s25 = smov [#allocation8]   ;;  %s973_s27 = smov [#allocation2]  }
  0x16   :  { %s59_s26 = sshll.u32 %s972_s25, 4  ;;  %s27_s28 = sshll.u32 %s973_s27, 4  ;;  %s60_s26 = int_to_ptr.vmem [resolvable:$true] %s59_s26  ;;  %s28_s28 = int_to_ptr.vmem [resolvable:$true] %s27_s28 }
  0x17   :  { %s805_s11 = scalar_lea.hbm %s1190_s3, 768 }
  0x18   :  { %p806_p8 = scmp.ne.s32.totalorder %s1190_s3, %s805_s11  ;;  %p809_p9 = scmp.lt.u32.totalorder %s805_s11, %s1190_s3 }
  0x1a   :  { %p811_p10 = pnand %p809_p9, %p806_p8 }
  0x1c   :  { %814 = shalt.err (!%p811_p10)
}
  0x1d   :  { %s815_s1 = scalar_lea.vmem %s60_s26, 768  ;;  %p820_p12 = scmp.lt.s32.totalorder %s60_s26, %s60_s26 }
  0x1e   :  { %p816_p11 = scmp.ne.s32.totalorder %s60_s26, %s815_s1  ;;  %p821_p13 = scmp.lt.s32.totalorder %s815_s1, %s815_s1 }
  0x20   :  { %p822_p0 = por %p821_p13, %p820_p12 }
  0x22   :  { %p823_p1 = pnand %p822_p0, %p816_p11 }
  0x24   :  { %826 = shalt.err (!%p823_p1)
}
  0x25   :  { %s974_s14 = smov 64   ;;  %s975_s17 = smov 4  }
  0x26   :  { %65 = dma.hbm_to_vmem [thread:$0]  %s1190_s3, 768, %s60_s26, [#allocation9], %s974_s14, %s974_s14, %s975_s17  }
  0x27   :  { %s827_s22 = scalar_lea.hbm %s1187_s0, 192 }
  0x28   :  { %p828_p2 = scmp.ne.s32.totalorder %s1187_s0, %s827_s22  ;;  %p831_p3 = scmp.lt.u32.totalorder %s827_s22, %s1187_s0 }
  0x2a   :  { %p833_p4 = pnand %p831_p3, %p828_p2 }
  0x2c   :  { %836 = shalt.err (!%p833_p4)
}
  0x2d   :  { %s837_s29 = scalar_lea.vmem %s28_s28, 192  ;;  %p842_p6 = scmp.lt.s32.totalorder %s28_s28, %s28_s28 }
  0x2e   :  { %p838_p5 = scmp.ne.s32.totalorder %s28_s28, %s837_s29  ;;  %p843_p7 = scmp.lt.s32.totalorder %s837_s29, %s837_s29 }
  0x30   :  { %p844_p8 = por %p843_p7, %p842_p6 }
  0x32   :  { %p845_p9 = pnand %p844_p8, %p838_p5 }
  0x34   :  { %848 = shalt.err (!%p845_p9)
}
  0x35   :  { %33 = dma.hbm_to_vmem [thread:$0]  %s1187_s0, 192, %s28_s28, [#allocation3], %s974_s14, %s974_s14, %s975_s17  }
  0x36   :  { %s976_s30 = smov [#allocation7]   ;;  %s977_s12 = smov [#allocation10]  }
  0x37   :  { %s50_s11 = sshll.u32 %s976_s30, 4  ;;  %s72_s13 = sshll.u32 %s977_s12, 4  ;;  %s51_s11 = int_to_ptr.vmem [resolvable:$true] %s50_s11  ;;  %s73_s13 = int_to_ptr.vmem [resolvable:$true] %s72_s13 }
  0x38   :  { %s849_s1 = scalar_lea.hbm %s1189_s2, 64 }
  0x39   :  { %p850_p10 = scmp.ne.s32.totalorder %s1189_s2, %s849_s1  ;;  %p853_p11 = scmp.lt.u32.totalorder %s849_s1, %s1189_s2 }
  0x3b   :  { %p855_p12 = pnand %p853_p11, %p850_p10 }
  0x3d   :  { %858 = shalt.err (!%p855_p12)
}
  0x3e   :  { %s859_s0 = scalar_lea.vmem %s51_s11, 64  ;;  %p864_p0 = scmp.lt.s32.totalorder %s51_s11, %s51_s11 }
  0x3f   :  { %p860_p13 = scmp.ne.s32.totalorder %s51_s11, %s859_s0  ;;  %p865_p1 = scmp.lt.s32.totalorder %s859_s0, %s859_s0 }
  0x41   :  { %p866_p2 = por %p865_p1, %p864_p0 }
  0x43   :  { %p867_p3 = pnand %p866_p2, %p860_p13 }
  0x45   :  { %870 = shalt.err (!%p867_p3)
}
  0x46   :  { %53 = dma.hbm_to_vmem [thread:$0]  %s1189_s2, 64, %s51_s11, [#allocation6]  }
  0x47   :  { %s871_s25 = scalar_lea.hbm %s1191_s4, 16 }
  0x48   :  { %p872_p4 = scmp.ne.s32.totalorder %s1191_s4, %s871_s25  ;;  %p875_p5 = scmp.lt.u32.totalorder %s871_s25, %s1191_s4 }
  0x4a   :  { %p877_p6 = pnand %p875_p5, %p872_p4 }
  0x4c   :  { %880 = shalt.err (!%p877_p6)
}
  0x4d   :  { %s881_s30 = scalar_lea.vmem %s73_s13, 16  ;;  %s885_s12 = scalar_lea.vmem %s73_s13, 32 }
  0x4e   :  { %p882_p7 = scmp.ne.s32.totalorder %s73_s13, %s881_s30  ;;  %p886_p8 = scmp.lt.s32.totalorder %s73_s13, %s73_s13 }
  0x4f   :  { %p887_p9 = scmp.lt.s32.totalorder %s885_s12, %s881_s30 }
  0x51   :  { %p888_p10 = por %p887_p9, %p886_p8 }
  0x53   :  { %p889_p11 = pnand %p888_p10, %p882_p7 }
  0x55   :  { %892 = shalt.err (!%p889_p11)
}
  0x56   :  { %75 = dma.hbm_to_vmem [thread:$0]  %s1191_s4, 16, %s73_s13, [#allocation9]  }
  0x57   :  { %s978_s15 = smov [#allocation11]   ;;  %s893_s19 = scalar_lea.hbm %s1194_s7, 512 }
  0x58   :  { %s85_s16 = sshll.u32 %s978_s15, 4  ;;  %p894_p12 = scmp.ne.s32.totalorder %s1194_s7, %s893_s19  ;;  %s86_s16 = int_to_ptr.vmem [resolvable:$true] %s85_s16 }
  0x59   :  { %p897_p13 = scmp.lt.u32.totalorder %s893_s19, %s1194_s7 }
  0x5b   :  { %p899_p0 = pnand %p897_p13, %p894_p12 }
  0x5d   :  { %902 = shalt.err (!%p899_p0)
}
  0x5e   :  { %s903_s22 = scalar_lea.vmem %s86_s16, 512  ;;  %p908_p2 = scmp.lt.s32.totalorder %s86_s16, %s86_s16 }
  0x5f   :  { %p904_p1 = scmp.ne.s32.totalorder %s86_s16, %s903_s22  ;;  %p909_p3 = scmp.lt.s32.totalorder %s903_s22, %s903_s22 }
  0x61   :  { %p910_p4 = por %p909_p3, %p908_p2 }
  0x63   :  { %p911_p5 = pnand %p910_p4, %p904_p1 }
  0x65   :  { %914 = shalt.err (!%p911_p5)
}
  0x66   :  { %91 = dma.hbm_to_vmem [thread:$0]  %s1194_s7, 512, %s86_s16, [#allocation12], %s974_s14, %s974_s14, %s975_s17  }
  0x67   :  { %959 = dma.done.wait [#allocation3], 192  }
  0x68   :  { %960 = vsyncadd [#allocation3], 4294967104 }
  0x69   :  { %961 = dma.done.wait [#allocation6], 128  }
  0x6a   :  { %962 = vsyncadd [#allocation6], 4294967168 }
  0x6b   :  { %963 = dma.done.wait [#allocation9], 784  }
  0x6c   :  { %964 = vsyncadd [#allocation9], 4294966512 }
  0x6d   :  { %965 = dma.done.wait [#allocation12], 512  }
  0x6e   :  { %966 = vsyncadd [#allocation12], 4294966784  ;;  %v979_v0 = vmov 0.0   ;;  %vm980_vm0 = vmmov 0   ;;  %v771_v1 = vld [vmem:[#allocation8 + $0x10] sm:$0xff]   ;;  %v772_v2 = vld [vmem:[#allocation8] sm:$0xff]  }
  0x6f   :  { %703 = vmatprep.subr.bf16.mxu0 %v979_v0  ;;  %711 = vmatprep.subr.bf16.mxu1 %v979_v0  ;;  %v773_v3 = vld [vmem:[#allocation8 + $0x18] sm:$0xff]   ;;  %v774_v4 = vld [vmem:[#allocation8 + $0x8] sm:$0xff]   ;;  %v119_v5 = vld [vmem:[#allocation2 + $0x4] sm:$0xf]  ;;  %vm137_vm1 = vcmask 261120   ;;  %vm599_vm2 = vcmask 1040384  }
  0x70   :  { %707 = vmatprep.mubr.msk.bf16.mxu0 %vm980_vm0, %v979_v0  ;;  %715 = vmatprep.mubr.msk.bf16.mxu1 %vm980_vm0, %v979_v0  ;;  %v113_v6 = vld [vmem:[#allocation2] sm:$0xf]  ;;  %v775_v7 = vld [vmem:[#allocation8 + $0x20] sm:$0xff]   ;;  %v237_v11 = vld [vmem:[#allocation2 + $0x8] sm:$0xf]  ;;  %vm601_vm3 = vcmask 1041408  }
  0x71   :  { %704 = vmatpush3.bf16.msra.mxu0 %v771_v1  ;;  %712 = vmatpush3.bf16.msra.mxu1 %v772_v2  ;;  %v776_v8 = vld [vmem:[%s1192_s5] sm:$0xff]   ;;  %v777_v9 = vld [vmem:[#allocation8 + $0x28] sm:$0xff]   ;;  %v313_v12 = vld [vmem:[#allocation5] sm:$0xf]  ;;  %s982_s26 = smov [#allocation14]   ;;  %vm603_vm4 = vcmask 59392  }
  0x72   :  { %705 = vmatprep.subr.bf16.mxu0 %v979_v0  ;;  %713 = vmatprep.subr.bf16.mxu1 %v979_v0  ;;  %v778_v10 = vld [vmem:[%s1192_s5 + $0x8] sm:$0xff]   ;;  %v779_v13 = vld [vmem:[#allocation11] sm:$0xff]   ;;  %v780_v14 = vld [vmem:[#allocation11 + $0x8] sm:$0xff]   ;;  %s642_s30 = sshll.u32 %s982_s26, 4  ;;  %s1154_s30 = int_to_ptr.vmem [resolvable:$true] %s642_s30 }
  0x73   :  { %v376_v15 = vld [vmem:[#allocation7] sm:$0xf]  ;;  %v781_v16 = vld [vmem:[#allocation11 + $0x10] sm:$0xff]   ;;  %v782_v17 = vld [vmem:[#allocation11 + $0x18] sm:$0xff]  }
  0x74   :  { %v668_v27 = vld [vmem:[%s1193_s6] ss:$0 sm:$0xff]  ;;  %v667_v29 = vld [vmem:[#allocation10] ss:$0 sm:$0xff]  ;;  %v678_v58 = vld [vmem:[%s1195_s8 + $0x1] ss:$0 sm:$0xff] }
  0x75   :  { %706 = vmatpush3.bf16.msra.mxu0 %v773_v3  ;;  %714 = vmatpush3.bf16.msra.mxu1 %v774_v4  ;;  %v673_v42 = vld [vmem:[%s1195_s8] ss:$0 sm:$0xff]  ;;  %s981_s8 = smov [#allocation13]  }
  0x76   :  { %719 = vmatprep.subr.bf16.mxu0 %v979_v0  ;;  %727 = vmatprep.subr.bf16.mxu1 %v979_v0  ;;  %s632_s3 = sshll.u32 %s981_s8, 4  ;;  %s633_s3 = int_to_ptr.vmem [resolvable:$true] %s632_s3 }
  0x77   :  { %s915_s12 = scalar_lea.vmem %s633_s3, 64  ;;  %p920_p7 = scmp.lt.s32.totalorder %s633_s3, %s633_s3 }
  0x78   :  { %708 = vmatmul.mubr.msk.bf16.vlgmr.msra.gmra.mrb[0].mxu0 %vm137_vm1, %v119_v5  ;;  %716 = vmatmul.mubr.msk.bf16.vlgmr.msra.gmra.mrb[0].mxu1 %vm137_vm1, %v113_v6  ;;  %p916_p6 = scmp.ne.s32.totalorder %s633_s3, %s915_s12  ;;  %p921_p8 = scmp.lt.s32.totalorder %s915_s12, %s915_s12 }
  0x79   :  { %720 = vmatpush3.bf16.msra.mxu0 %v775_v7  ;;  %728 = vmatpush3.bf16.msra.mxu1 %v776_v8 }
  0x7a   :  { %721 = vmatprep.subr.bf16.mxu0 %v979_v0  ;;  %729 = vmatprep.subr.bf16.mxu1 %v979_v0  ;;  %p922_p9 = por %p921_p8, %p920_p7 }
  0x7b   :  { %723 = vmatprep.mubr.msk.bf16.mxu0 %vm980_vm0, %v979_v0  ;;  %731 = vmatprep.mubr.msk.bf16.mxu1 %vm980_vm0, %v979_v0 }
  0x7c   :  { %p923_p10 = pnand %p922_p9, %p916_p6 }
  0x7d   :  { %722 = vmatpush3.bf16.msra.mxu0 %v777_v9  ;;  %730 = vmatpush3.bf16.msra.mxu1 %v778_v10 }
  0x7e   :  { %735 = vmatprep.subr.bf16.mxu0 %v979_v0  ;;  %743 = vmatprep.subr.bf16.mxu1 %v979_v0 }
  0x80   :  { %724 = vmatmul.mubr.msk.bf16.vlgmr.msra.gmra.mrb[4].mxu0 %vm137_vm1, %v237_v11  ;;  %732 = vmatmul.mubr.msk.bf16.vlgmr.msra.gmra.mrb[4].mxu1 %vm137_vm1, %v313_v12 }
  0x81   :  { %736 = vmatpush3.bf16.msra.mxu0 %v776_v8  ;;  %744 = vmatpush3.bf16.msra.mxu1 %v779_v13 }
  0x82   :  { %737 = vmatprep.subr.bf16.mxu0 %v979_v0  ;;  %745 = vmatprep.subr.bf16.mxu1 %v979_v0 }
  0x83   :  { %739 = vmatprep.mubr.msk.bf16.mxu0 %vm980_vm0, %v979_v0  ;;  %747 = vmatprep.mubr.msk.bf16.mxu1 %vm980_vm0, %v979_v0 }
  0x85   :  { %738 = vmatpush3.bf16.msra.mxu0 %v778_v10  ;;  %746 = vmatpush3.bf16.msra.mxu1 %v780_v14  ;;  %v580_v10 = vlaneseq }
  0x86   :  { %751 = vmatprep.subr.bf16.mxu0 %v979_v0 }
  0x87   :  { %v581_v13 = vand.u32 127, %v580_v10  ;;  %v583_v14 = vshrl.u32 %v580_v10, 7 }
  0x88   :  { %740 = vmatmul.mubr.msk.bf16.vlgmr.msra.gmra.mrb[8].mxu0 %vm137_vm1, %v376_v15  ;;  %748 = vmatmul.mubr.msk.bf16.vlgmr.msra.gmra.mrb[8].mxu1 %vm137_vm1, %v119_v5 }
  0x89   :  { %752 = vmatpush3.bf16.msra.mxu0 %v781_v16  ;;  %755 = vmatprep.mubr.msk.bf16.mxu0 %vm980_vm0, %v979_v0 }
  0x8a   :  { %753 = vmatprep.subr.bf16.mxu0 %v979_v0 }
  0x8d   :  { %754 = vmatpush3.bf16.msra.mxu0 %v782_v17 }
  0x90   :  { %756 = vmatmul.mubr.msk.bf16.vlgmr.msra.gmra.mrb[12].mxu0 %vm137_vm1, %v237_v11 }
 0x14b   :  { %v175_v18 = vpop.f32.mrb[0].mxu0  ;;  %v230_v19 = vpop.f32.mrb[0].mxu1 }
 0x14c   :  { %v709_v20 = vpop.f32.mrb[1].mxu0  ;;  %v231_v21 = vadd.f32 %v230_v19, %v175_v18  ;;  %v717_v22 = vpop.f32.mrb[1].mxu1  ;;  %v584_v18 = vsub.s32 %v581_v13, %v583_v14 }
 0x14d   :  { %v178_v23 = vpop.f32.mrb[2].mxu0  ;;  %v233_v24 = vpop.f32.mrb[2].mxu1 }
 0x14e   :  { %v710_v25 = vpop.f32.mrb[3].mxu0  ;;  %v718_v26 = vpop.f32.mrb[3].mxu1 }
 0x153   :  { %v292_v28 = vpop.f32.mrb[4].mxu0  ;;  %v369_v31 = vpop.f32.mrb[4].mxu1 }
 0x154   :  { %v298_v30 = vadd.f32 %v292_v28, %v231_v21  ;;  %v725_v32 = vpop.f32.mrb[5].mxu0  ;;  %v370_v33 = vadd.f32 %v668_v27, %v369_v31  ;;  %v733_v34 = vpop.f32.mrb[5].mxu1 }
 0x155   :  { %v295_v35 = vpop.f32.mrb[6].mxu0  ;;  %v372_v37 = vpop.f32.mrb[6].mxu1 }
 0x156   :  { %v306_v36 = vadd.f32 %v667_v29, %v298_v30  ;;  %v726_v38 = vpop.f32.mrb[7].mxu0  ;;  %v734_v39 = vpop.f32.mrb[7].mxu1  ;;  %v375_v41 = vmax.f32 %v370_v33, 0.0 }
 0x158   :  { %v307_v40 = vmax.f32 %v306_v36, 0.0 }
 0x15a   :  { %v421_v43 = vmul.f32 %v375_v41, %v307_v40 }
 0x15b   :  { %v414_v44 = vpop.f32.mrb[8].mxu0  ;;  %v486_v46 = vpop.f32.mrb[8].mxu1 }
 0x15c   :  { %v415_v45 = vadd.f32 %v668_v27, %v414_v44  ;;  %v741_v47 = vpop.f32.mrb[9].mxu0  ;;  %v422_v48 = vsel %vm137_vm1, %v421_v43, 0.0  ;;  %v487_v49 = vadd.f32 %v673_v42, %v486_v46  ;;  %v749_v50 = vpop.f32.mrb[9].mxu1 }
 0x15d   :  { %v417_v51 = vpop.f32.mrb[10].mxu0  ;;  %423 = vadd.xlane.f32.xlu0 %v422_v48  ;;  %v489_v53 = vpop.f32.mrb[10].mxu1 }
 0x15e   :  { %v420_v52 = vmax.f32 %v415_v45, 0.0  ;;  %v742_v54 = vpop.f32.mrb[11].mxu0  ;;  %v492_v55 = vmax.f32 %v487_v49, 0.0  ;;  %v750_v56 = vpop.f32.mrb[11].mxu1 }
 0x160   :  { %v425_v57 = vmul.f32 %v420_v52, %v307_v40  ;;  %v493_v59 = vmul.f32 %v492_v55, %v375_v41  ;;  %v497_v60 = vmul.f32 %v492_v55, %v420_v52 }
 0x162   :  { %v426_v61 = vsel %vm137_vm1, %v425_v57, 0.0  ;;  %v494_v63 = vsel %vm137_vm1, %v493_v59, 0.0  ;;  %v498_v5 = vsel %vm137_vm1, %v497_v60, 0.0 }
 0x163   :  { %v562_v62 = vpop.f32.mrb[12].mxu0  ;;  %427 = vadd.xlane.f32.xlu0 %v426_v61  ;;  %495 = vadd.xlane.f32.xlu1 %v494_v63 }
 0x164   :  { %v563_v0 = vadd.f32 %v678_v58, %v562_v62  ;;  %v757_v1 = vpop.f32.mrb[13].mxu0 }
 0x165   :  { %v565_v2 = vpop.f32.mrb[14].mxu0 }
 0x166   :  { %v568_v3 = vmax.f32 %v563_v0, 0.0  ;;  %v758_v4 = vpop.f32.mrb[15].mxu0 }
 0x167   :  { %499 = vadd.xlane.f32.xlu1 %v498_v5 }
 0x168   :  { %v569_v6 = vmul.f32 %v568_v3, %v375_v41  ;;  %v573_v7 = vmul.f32 %v568_v3, %v420_v52 }
 0x16a   :  { %v570_v8 = vsel %vm137_vm1, %v569_v6, 0.0  ;;  %v574_v9 = vsel %vm137_vm1, %v573_v7, 0.0 }
 0x16b   :  { %571 = vadd.xlane.f32.xlu0 %v570_v8  ;;  %575 = vadd.xlane.f32.xlu1 %v574_v9 }
 0x1ea   :  { %v424_v11 = vpop.xlane.xlu0 %423 }
 0x1eb   :  { %v585_v25 = vrot.slane %v424_v11, %v584_v18 }
 0x1f0   :  { %v496_v12 = vpop.xlane.xlu1 %495  ;;  %v428_v15 = vpop.xlane.xlu0 %427 }
 0x1f1   :  { %v501_v16 = vadd.f32 %v496_v12, %v424_v11  ;;  %v609_v27 = vrot.slane %v428_v15, %v584_v18 }
 0x1f3   :  { %v591_v20 = vrot.slane %v501_v16, %v584_v18 }
 0x1f4   :  { %v500_v17 = vpop.xlane.xlu1 %499 }
 0x1f5   :  { %v502_v19 = vadd.f32 %v500_v17, %v428_v15  ;;  %v600_v30 = vsel %vm599_vm2, %v585_v25, %v591_v20 }
 0x1f7   :  { %v615_v22 = vrot.slane %v502_v19, %v584_v18 }
 0x1f8   :  { %v572_v21 = vpop.xlane.xlu0 %571  ;;  %v576_v24 = vpop.xlane.xlu1 %575 }
 0x1f9   :  { %v577_v23 = vadd.f32 %v572_v21, %v501_v16  ;;  %v578_v26 = vadd.f32 %v576_v24, %v502_v19  ;;  %v623_v32 = vsel %vm599_vm2, %v609_v27, %v615_v22 }
 0x1fb   :  { %v597_v28 = vrot.slane %v577_v23, %v584_v18  ;;  %v621_v29 = vrot.slane %v578_v26, %v584_v18 }
 0x1fd   :  { %v602_v31 = vsel %vm601_vm3, %v600_v30, %v597_v28  ;;  %v624_v33 = vsel %vm601_vm3, %v623_v32, %v621_v29 }
 0x1fe   :  { %604 = vst.msk [vmem:[#allocation13] sm:$0x7] %vm603_vm4, %v602_v31 }
 0x1ff   :  { %926 = shalt.err (!%p923_p10)
}
 0x200   :  { %s927_s15 = scalar_lea.hbm %s1196_s9, 64 }
 0x201   :  { %p928_p11 = scmp.ne.s32.totalorder %s1196_s9, %s927_s15  ;;  %p931_p12 = scmp.lt.u32.totalorder %s927_s15, %s1196_s9 }
 0x203   :  { %p933_p13 = pnand %p931_p12, %p928_p11 }
 0x205   :  { %936 = shalt.err (!%p933_p13)
}
 0x206   :  { %635 = dma.vmem_to_hbm [thread:$0]  %s633_s3, 64, %s1196_s9, [#allocation4]   ;;  %625 = vst.msk [vmem:[#allocation14] sm:$0x7] %vm603_vm4, %v624_v33 }
 0x207   :  { %s937_s0 = scalar_lea.vmem %s1154_s30, 64  ;;  %p942_p1 = scmp.lt.s32.totalorder %s1154_s30, %s1154_s30 }
 0x208   :  { %p938_p0 = scmp.ne.s32.totalorder %s1154_s30, %s937_s0  ;;  %p943_p2 = scmp.lt.s32.totalorder %s937_s0, %s937_s0 }
 0x20a   :  { %p944_p3 = por %p943_p2, %p942_p1 }
 0x20c   :  { %p945_p4 = pnand %p944_p3, %p938_p0 }
 0x20e   :  { %948 = shalt.err (!%p945_p4)
}
 0x20f   :  { %s949_s4 = scalar_lea.hbm %s1197_s10, 64 }
 0x210   :  { %p950_p5 = scmp.ne.s32.totalorder %s1197_s10, %s949_s4  ;;  %p953_p6 = scmp.lt.u32.totalorder %s949_s4, %s1197_s10 }
 0x212   :  { %p955_p7 = pnand %p953_p6, %p950_p5 }
 0x214   :  { %958 = shalt.err (!%p955_p7)
}
 0x215   :  { %645 = dma.vmem_to_hbm [thread:$0]  %s1154_s30, 64, %s1197_s10, [#allocation15]  }
 0x216   :  { %967 = dma.done.wait [#allocation4], 64  }
 0x217   :  { %968 = vsyncadd [#allocation4], 4294967232 }
 0x218   :  { %969 = dma.done.wait [#allocation15], 64  }
 0x219   :  { %970 = vsyncadd [#allocation15], 4294967232 }
 0x21a   :  { %652 = vsyncpa [#allocation3], 1 }
 0x21b   :  { %653 = vsyncpa [#allocation6], 1 }
 0x21c   :  { %654 = vsyncpa [#allocation9], 1 }
 0x21d   :  { %655 = vsyncpa [#allocation12], 1 }
 0x21e   :  { %656 = vsyncpa [#allocation4], 1 }
 0x21f   :  { %657 = vsyncpa [#allocation15], 1 }

</bundles_post_ra>
